<compile_context>
chip_gen: v7x
topology: tpu7x:2x2x1
jax: 0.10.0
libtpu: 0.0.40
codegen_flags: <defaults>
</compile_context>

<pallas_src>
import jax
import jax.numpy as jnp
from jax.experimental import pallas as pl
from jax.experimental.pallas import tpu as pltpu


def _bcast_kernel(const_ref, out_ref):
    # const_ref: (1, ...) VMEM tile of the learned constant.
    # out_ref:   (b_blk, ...) VMEM tile of the output batch slab.
    out_ref[...] = jnp.broadcast_to(const_ref[...], out_ref.shape)


def _pick_batch_block(batch, row_bytes, max_block_bytes, align, small_total_bytes):
    """Batch rows written per grid step.

    Keeps blocks `align`-row aligned, <= max_block_bytes, and targets >= 2 grid
    steps for large outputs (fill/writeback overlap + v7x two-TC split),
    preferring a block that divides `batch` so every writeback block is full.
    """
    total_bytes = batch * row_bytes
    if total_bytes <= small_total_bytes or batch <= align:
        # Small output (launch-overhead bound) -> single full block.
        return batch
    cap_rows = max(align, (max_block_bytes // max(row_bytes, 1)) // align * align)
    half_rows = max(align, (batch // 2) // align * align)   # guarantees >= 2 steps
    b_blk = min(cap_rows, half_rows, batch)
    b_blk = max(align, (b_blk // align) * align)
    cand = b_blk
    while cand >= align:
        if batch % cand == 0:
            return cand
        cand -= align
    return b_blk  # partial last block; Pallas masks its writeback


def constant_input_forward(const, batch, *, max_block_bytes=6 << 20,
                           small_total_bytes=4 << 20):
    """Replicate `const` (1, C, S, S) across the batch dimension -> (B, C, S, S)."""
    _, C, S1, S2 = const.shape
    D = C * S1 * S2
    dtype = const.dtype
    itemsize = jnp.dtype(dtype).itemsize
    # Native sublane count per vreg for this dtype: 8 (f32), 16 (bf16), 32 (int8).
    sublanes = max(8, 32 // itemsize)
    row_bytes = D * itemsize

    # ---- Path A: dense (sublanes, D/sublanes) const tile, 3-D batched output.
    if D % (sublanes * 128) == 0:
        dl = D // sublanes
        b_blk = _pick_batch_block(batch, row_bytes, max_block_bytes, 1,
                                  small_total_bytes)
        grid = (pl.cdiv(batch, b_blk),)
        out = pl.pallas_call(
            _bcast_kernel,
            out_shape=jax.ShapeDtypeStruct((batch, sublanes, dl), dtype),
            grid_spec=pltpu.PrefetchScalarGridSpec(
                num_scalar_prefetch=0,
                grid=grid,
                # Constant: one dense (1, sublanes, dl) block, same block index
                # every step -> not re-fetched.
                in_specs=[pl.BlockSpec((1, sublanes, dl), lambda i: (0, 0, 0))],
                # Output: lane-dense batch slab per step.
                out_specs=pl.BlockSpec((b_blk, sublanes, dl), lambda i: (i, 0, 0)),
            ),
            compiler_params=pltpu.CompilerParams(
                dimension_semantics=("parallel",)),
        )(const.reshape(1, sublanes, dl))
        return out.reshape(batch, C, S1, S2)

    # ---- Path B: lane-dense 2-D (B, D) output, sublane-aligned batch blocks.
    if D % 128 == 0:
        b_blk = _pick_batch_block(batch, row_bytes, max_block_bytes, sublanes,
                                  small_total_bytes)
        grid = (pl.cdiv(batch, b_blk),)
        out = pl.pallas_call(
            _bcast_kernel,
            out_shape=jax.ShapeDtypeStruct((batch, D), dtype),
            grid_spec=pltpu.PrefetchScalarGridSpec(
                num_scalar_prefetch=0,
                grid=grid,
                in_specs=[pl.BlockSpec((1, D), lambda i: (0, 0))],
                out_specs=pl.BlockSpec((b_blk, D), lambda i: (i, 0)),
            ),
            compiler_params=pltpu.CompilerParams(
                dimension_semantics=("parallel",)),
        )(const.reshape(1, D))
        return out.reshape(batch, C, S1, S2)

    # ---- Path C: tiny / odd-D fallback — one full-array block. Masked lane
    # stores, acceptable only because this path is hit for tiny feature maps.
    # TODO(synk): for huge batch with D not a multiple of 128, flatten to a
    # lane-dense (1, batch*D) view with an in-kernel tile instead.
    out = pl.pallas_call(
        _bcast_kernel,
        out_shape=jax.ShapeDtypeStruct((batch, D), dtype),
        grid_spec=pltpu.PrefetchScalarGridSpec(
            num_scalar_prefetch=0,
            grid=(1,),
            in_specs=[pl.BlockSpec((1, D), lambda i: (0, 0))],
            out_specs=pl.BlockSpec((batch, D), lambda i: (0, 0)),
        ),
    )(const.reshape(1, D))
    return out.reshape(batch, C, S1, S2)


class ConstantInput:
    """JAX mirror of the PyTorch ConstantInput module."""

    def __init__(self, channel, size=4, key=None):
        if key is None:
            key = jax.random.PRNGKey(0)
        # Deterministic stand-in for torch.randn(1, channel, size, size).
        self.input = jax.random.normal(
            key, (1, channel, size, size), dtype=jnp.float32)

    def __call__(self, x):
        # Only x.shape[0] is consumed, matching the PyTorch forward.
        return constant_input_forward(self.input, x.shape[0])


if __name__ == "__main__":
    key = jax.random.PRNGKey(0)
    k1, k2, kx = jax.random.split(key, 3)

    # 1) Module-default toy shape (channel=4, size=4 -> D=64, fallback path).
    batch, channel, size = 2, 4, 4
    module = ConstantInput(channel, size=size, key=k1)
    x = jax.random.normal(kx, (batch, 8), dtype=jnp.float32)  # latent stand-in
    out = jax.block_until_ready(module(x))
    ref = jnp.broadcast_to(module.input, (batch, channel, size, size))
    assert out.shape == (batch, channel, size, size)
    assert out.dtype == module.input.dtype
    assert bool(jnp.all(out == ref))

    # 2) Dense-tile path: channel=64, size=4 -> D=1024 -> (8, 128) const tile.
    module2 = ConstantInput(64, size=4, key=k2)
    b2 = 16
    out2 = jax.block_until_ready(constant_input_forward(module2.input, b2))
    ref2 = jnp.broadcast_to(module2.input, (b2, 64, 4, 4))
    assert bool(jnp.all(out2 == ref2))

    # 3) Same module, forced multi-step grid (tiny blocks) to exercise the
    #    pipelined / multi-TC batch-slab path cheaply.
    out3 = jax.block_until_ready(
        constant_input_forward(module2.input, b2,
                               max_block_bytes=16 << 10, small_total_bytes=0))
    assert bool(jnp.all(out3 == ref2))

    print("KERNEL_OK")
</pallas_src>

<mosaic_0001>
module attributes {stable_mosaic.version = 11 : i64} {
  func.func @_bcast_kernel(%arg0: i32, %arg1: memref<1x64xf32, #tpu.memory_space<vmem>>, %arg2: memref<2x64xf32, #tpu.memory_space<vmem>>) attributes {dimension_semantics = [#tpu.dimension_semantics<arbitrary>], iteration_bounds = array<i64: 1>, scalar_prefetch = 0 : i64, scratch_operands = 0 : i64, tpu.core_type = #tpu.core_type<tc>, window_params = [{pipeline_mode = #tpu.pipeline_mode<synchronous>, transform_indices = @transform_0, window_bounds = array<i64: 1, 64>}, {pipeline_mode = #tpu.pipeline_mode<synchronous>, transform_indices = @transform_1, window_bounds = array<i64: 2, 64>}]} {
    %c0 = arith.constant 0 : index
    %c0_0 = arith.constant 0 : index
    %0 = vector.load %arg1[%c0, %c0_0] : memref<1x64xf32, #tpu.memory_space<vmem>>, vector<1x64xf32>
    %1 = vector.shape_cast %0 : vector<1x64xf32> to vector<1x64xf32>
    %2 = vector.broadcast %1 : vector<1x64xf32> to vector<2x64xf32>
    %c0_1 = arith.constant 0 : index
    %c0_2 = arith.constant 0 : index
    %3 = vector.load %arg2[%c0_1, %c0_2] : memref<2x64xf32, #tpu.memory_space<vmem>>, vector<2x64xf32>
    tpu.vector_store %arg2[%c0_1, %c0_2], %2 {strides = array<i32>} : memref<2x64xf32, #tpu.memory_space<vmem>>, vector<2x64xf32>,
    return
  }
  func.func @transform_0(%arg0: i32) -> (i32, i32) {
    %c0_i32 = arith.constant 0 : i32
    %c0_i32_0 = arith.constant 0 : i32
    %c0_i32_1 = arith.constant 0 : i32
    return %c0_i32, %c0_i32_0 : i32, i32
  }
  func.func @transform_1(%arg0: i32) -> (i32, i32) {
    %c0_i32 = arith.constant 0 : i32
    %c0_i32_0 = arith.constant 0 : i32
    %c0_i32_1 = arith.constant 0 : i32
    return %c0_i32, %c0_i32_0 : i32, i32
  }
}

</mosaic_0001>

<bundles_post_ra>
// kernel: tpu_custom_call.1
= control target key start
LH: loop header
LB: loop body
LE: loop exit
PB: predicated region body
PF: predicated region fallthrough
CT: control target
= control target key end

     0   :  { %6 = vsyncpa [#allocation3], 0  ;;  %s132_s0 = inlined_call_operand.hbm [shape: f32[1,64], index: 0, kind: input, shape index: {}]   ;;  %s133_s1 = inlined_call_operand.hbm [shape: f32[2,64], index: 1, kind: output, shape index: {}]  }
   0x1   :  { %7 = vsyncpa [#allocation4], 0  ;;  %s96_s6 = smov [#allocation2]   ;;  %s48_s10 = scalar_lea.hbm %s132_s0, 16 }
   0x2   :  { %s14_s7 = sshll.u32 %s96_s6, 4  ;;  %p49_p0 = scmp.ne.s32.totalorder %s132_s0, %s48_s10  ;;  %s15_s7 = int_to_ptr.vmem [resolvable:$true] %s14_s7 }
   0x3   :  { %p52_p1 = scmp.lt.u32.totalorder %s48_s10, %s132_s0 }
   0x5   :  { %p54_p2 = pnand %p52_p1, %p49_p0 }
   0x7   :  { %57 = shalt.err (!%p54_p2)
}
   0x8   :  { %s58_s15 = scalar_lea.vmem %s15_s7, 16  ;;  %s62_s16 = scalar_lea.vmem %s15_s7, 32 }
   0x9   :  { %p59_p3 = scmp.ne.s32.totalorder %s15_s7, %s58_s15  ;;  %p63_p4 = scmp.lt.s32.totalorder %s15_s7, %s15_s7 }
   0xa   :  { %p64_p5 = scmp.lt.s32.totalorder %s62_s16, %s58_s15 }
   0xc   :  { %p65_p6 = por %p64_p5, %p63_p4 }
   0xe   :  { %p66_p7 = pnand %p65_p6, %p59_p3 }
  0x10   :  { %69 = shalt.err (!%p66_p7)
}
  0x11   :  { %17 = dma.hbm_to_vmem [thread:$0]  %s132_s0, 16, %s15_s7, [#allocation3]  }
  0x12   :  { %92 = dma.done.wait [#allocation3], 16  }
  0x13   :  { %93 = vsyncadd [#allocation3], 4294967280  ;;  %s97_s19 = smov [#allocation5]   ;;  %vm28_vm0 = vcmask 517120   ;;  %v45_v0 = vld [vmem:[#allocation2] ss:$0 sm:$0xff] }
  0x14   :  { %s36_s20 = sshll.u32 %s97_s19, 4  ;;  %29 = vst.msk [vmem:[#allocation5] sm:$0x3] %vm28_vm0, %v45_v0  ;;  %s37_s20 = int_to_ptr.vmem [resolvable:$true] %s36_s20 }
  0x15   :  { %s70_s21 = scalar_lea.vmem %s37_s20, 32  ;;  %p75_p9 = scmp.lt.s32.totalorder %s37_s20, %s37_s20 }
  0x16   :  { %p71_p8 = scmp.ne.s32.totalorder %s37_s20, %s70_s21  ;;  %p76_p10 = scmp.lt.s32.totalorder %s70_s21, %s70_s21 }
  0x18   :  { %p77_p11 = por %p76_p10, %p75_p9 }
  0x1a   :  { %p78_p12 = pnand %p77_p11, %p71_p8 }
  0x1c   :  { %81 = shalt.err (!%p78_p12)
}
  0x1d   :  { %s82_s24 = scalar_lea.hbm %s133_s1, 32 }
  0x1e   :  { %p83_p13 = scmp.ne.s32.totalorder %s133_s1, %s82_s24  ;;  %p86_p0 = scmp.lt.u32.totalorder %s82_s24, %s133_s1 }
  0x20   :  { %p88_p1 = pnand %p86_p0, %p83_p13 }
  0x22   :  { %91 = shalt.err (!%p88_p1)
}
  0x23   :  { %39 = dma.vmem_to_hbm [thread:$0]  %s37_s20, 32, %s133_s1, [#allocation4]  }
  0x24   :  { %94 = dma.done.wait [#allocation4], 32  }
  0x25   :  { %95 = vsyncadd [#allocation4], 4294967264 }
  0x26   :  { %43 = vsyncpa [#allocation3], 1 }
  0x27   :  { %44 = vsyncpa [#allocation4], 1 }

</bundles_post_ra>
